<compile_context>
chip_gen: v7x
topology: tpu7x:2x2x1
jax: 0.10.0
libtpu: 0.0.40
codegen_flags: <defaults>
</compile_context>

<pallas_src>
import math
import functools

import jax
import jax.numpy as jnp
from jax.experimental import pallas as pl
from jax.experimental.pallas import tpu as pltpu


_MAX_S_TILE = 512  # keeps double-buffered x/out/PE tiles well under 48 MiB


def _round_up(n, m):
    return (n + m - 1) // m * m


def _embedding_kernel(*refs, has_pe: bool):
    # refs: x_ref (1, S_TILE, K), w_ref (M_pad, K), b_ref (1, M_pad),
    #       [pe_ref (S_TILE, M_pad)], o_ref (1, S_TILE, M_pad)
    if has_pe:
        x_ref, w_ref, b_ref, pe_ref, o_ref = refs
    else:
        x_ref, w_ref, b_ref, o_ref = refs
        pe_ref = None

    x = x_ref[0]                                          # (S_TILE, K)
    # y = x @ W^T : contract K against the weight's second axis (PyTorch
    # layout); rhs-transposed matmul is native on the MXU.
    y = jax.lax.dot_general(
        x, w_ref[...],
        dimension_numbers=(((1,), (1,)), ((), ())),
        preferred_element_type=jnp.float32)               # (S_TILE, M_pad) f32
    y = y + b_ref[...].astype(jnp.float32)                # bias broadcast
    if has_pe:
        y = y + pe_ref[...].astype(jnp.float32)           # positional encoding
    o_ref[0] = y.astype(o_ref.dtype)


def _position_encoding(S, M):
    """Matches GTN.position_encode (requires even d_model)."""
    assert M % 2 == 0, "d_model must be even for position_encode"
    pos = jnp.arange(S, dtype=jnp.float32)[:, None]
    freq = jnp.exp(jnp.arange(0, M, 2, dtype=jnp.float32)
                   * (-math.log(10000.0) / M))
    ang = pos * freq[None, :]                             # (S, M//2)
    pe = jnp.zeros((S, M), jnp.float32)
    pe = pe.at[:, 0::2].set(jnp.sin(ang))
    pe = pe.at[:, 1::2].set(jnp.cos(ang))
    return pe


def _embed_call(x_rows, weight, bias, pe=None):
    """x_rows: (B, S, K) rows to embed; weight: (M, K) PyTorch Linear layout;
    bias: (M,); pe: optional (S, M) added to every batch element."""
    B, S, K = x_rows.shape
    M = weight.shape[0]
    dtype = x_rows.dtype
    itemsize = jnp.dtype(dtype).itemsize

    # Lane-dense output: pad d_model up to a multiple of 128 (zero rows of W,
    # zero bias / PE columns -> padded output columns are zero, sliced off).
    M_pad = _round_up(M, 128)
    w_p = jnp.pad(weight.astype(dtype), ((0, M_pad - M), (0, 0)))     # (M_pad, K)
    b_p = jnp.pad(bias.astype(dtype), (0, M_pad - M)).reshape(1, M_pad)

    has_pe = pe is not None
    if has_pe:
        pe_p = jnp.pad(pe.astype(dtype), ((0, 0), (0, M_pad - M)))    # (S, M_pad)

    s_tile = S if S <= _MAX_S_TILE else _MAX_S_TILE
    n_s = pl.cdiv(S, s_tile)

    in_specs = [
        pl.BlockSpec((1, s_tile, K), lambda s, b: (b, s, 0)),
        pl.BlockSpec((M_pad, K), lambda s, b: (0, 0)),
        pl.BlockSpec((1, M_pad), lambda s, b: (0, 0)),
    ]
    inputs = [x_rows, w_p, b_p]
    if has_pe:
        # Block index is constant across b (the inner grid axis), so each PE
        # tile is DMA'd once per S tile and reused for the whole batch.
        in_specs.append(pl.BlockSpec((s_tile, M_pad), lambda s, b: (s, 0)))
        inputs.append(pe_p)

    cost = pl.CostEstimate(
        flops=2 * B * S * K * M_pad,
        transcendentals=0,
        bytes_accessed=(x_rows.size + w_p.size + b_p.size
                        + (pe_p.size if has_pe else 0)
                        + B * S * M_pad) * itemsize)

    kernel = functools.partial(_embedding_kernel, has_pe=has_pe)
    y = pl.pallas_call(
        kernel,
        out_shape=jax.ShapeDtypeStruct((B, S, M_pad), dtype),
        grid_spec=pltpu.PrefetchScalarGridSpec(
            num_scalar_prefetch=0,
            grid=(n_s, B),
            in_specs=in_specs,
            out_specs=pl.BlockSpec((1, s_tile, M_pad), lambda s, b: (b, s, 0)),
        ),
        compiler_params=pltpu.CompilerParams(
            dimension_semantics=("parallel", "parallel"),
            vmem_limit_bytes=48 * 1024 * 1024),
        cost_estimate=cost,
    )(*inputs)
    return y[..., :M] if M_pad != M else y


class Embedding:
    """JAX/Pallas port of GTN.Embedding. Deterministic parameter init."""

    def __init__(self, d_feature, d_timestep, d_model, wise='timestep',
                 key=None):
        assert wise in ('timestep', 'feature'), 'Embedding wise error!'
        self.wise = wise
        self.d_model = d_model
        in_features = d_feature if wise == 'timestep' else d_timestep
        key = jax.random.PRNGKey(0) if key is None else key
        kw, kb = jax.random.split(key)
        bound = 1.0 / math.sqrt(in_features)
        # PyTorch nn.Linear weight layout: (out_features, in_features)
        self.weight = jax.random.uniform(kw, (d_model, in_features),
                                         jnp.float32, -bound, bound)
        self.bias = jax.random.uniform(kb, (d_model,),
                                       jnp.float32, -bound, bound)

    def __call__(self, x):
        if self.wise == 'feature':
            y = _embed_call(x, self.weight, self.bias, pe=None)
        else:  # 'timestep'
            x_t = jnp.swapaxes(x, -1, -2)        # (B, d_timestep, d_feature)
            pe = _position_encoding(x_t.shape[1], self.d_model)
            y = _embed_call(x_t, self.weight, self.bias, pe=pe)
        return (y, None)


def _reference(x, weight, bias, wise):
    """Pure-JAX reference reproducing the PyTorch forward."""
    if wise == 'feature':
        return x @ weight.T + bias
    x_t = jnp.swapaxes(x, -1, -2)
    y = x_t @ weight.T + bias
    S, M = y.shape[1], y.shape[2]
    position = jnp.arange(S, dtype=jnp.float32)[:, None]
    temp = jnp.arange(0, M, 2, dtype=jnp.float32) * (-math.log(10000.0) / M)
    temp = position @ jnp.exp(temp)[None, :]
    pe = jnp.ones((S, M), jnp.float32)
    pe = pe.at[:, 0::2].set(jnp.sin(temp))
    pe = pe.at[:, 1::2].set(jnp.cos(temp))
    return y + pe


if __name__ == "__main__":
    B, d_feature, d_timestep, d_model = 2, 4, 8, 32
    key = jax.random.PRNGKey(0)
    kx, kp = jax.random.split(key)
    x = jax.random.normal(kx, (B, d_feature, d_timestep), jnp.float32)

    # wise='timestep' (linear over features + positional encoding)
    emb_t = Embedding(d_feature, d_timestep, d_model, wise='timestep', key=kp)
    y_t, _ = emb_t(x)
    y_t = jax.block_until_ready(y_t)
    ref_t = _reference(x, emb_t.weight, emb_t.bias, 'timestep')
    assert y_t.shape == (B, d_timestep, d_model)
    assert jnp.allclose(y_t, ref_t, atol=1e-4, rtol=1e-4)

    # wise='feature' (linear over timesteps, no positional encoding)
    emb_f = Embedding(d_feature, d_timestep, d_model, wise='feature', key=kp)
    y_f, _ = emb_f(x)
    y_f = jax.block_until_ready(y_f)
    ref_f = _reference(x, emb_f.weight, emb_f.bias, 'feature')
    assert y_f.shape == (B, d_feature, d_model)
    assert jnp.allclose(y_f, ref_f, atol=1e-4, rtol=1e-4)

    print("KERNEL_OK")
</pallas_src>

<mosaic_0001>
module attributes {stable_mosaic.version = 11 : i64} {
  func.func @_embedding_kernel(%arg0: i32, %arg1: i32, %arg2: memref<1x8x4xf32, #tpu.memory_space<vmem>>, %arg3: memref<128x4xf32, #tpu.memory_space<vmem>>, %arg4: memref<1x128xf32, #tpu.memory_space<vmem>>, %arg5: memref<8x128xf32, #tpu.memory_space<vmem>>, %arg6: memref<1x8x128xf32, #tpu.memory_space<vmem>>) attributes {dimension_semantics = [#tpu.dimension_semantics<parallel>, #tpu.dimension_semantics<parallel>], iteration_bounds = array<i64: 1, 2>, scalar_prefetch = 0 : i64, scratch_operands = 0 : i64, tpu.core_type = #tpu.core_type<tc>, window_params = [{transform_indices = @transform_0, window_bounds = array<i64: 1, 8, 4>}, {pipeline_mode = #tpu.pipeline_mode<synchronous>, transform_indices = @transform_1, window_bounds = array<i64: 128, 4>}, {pipeline_mode = #tpu.pipeline_mode<synchronous>, transform_indices = @transform_2, window_bounds = array<i64: 1, 128>}, {transform_indices = @transform_3, window_bounds = array<i64: 8, 128>}, {transform_indices = @transform_4, window_bounds = array<i64: 1, 8, 128>}]} {
    %c0 = arith.constant 0 : index
    %c0_0 = arith.constant 0 : index
    %c0_1 = arith.constant 0 : index
    %0 = vector.load %arg2[%c0, %c0_0, %c0_1] : memref<1x8x4xf32, #tpu.memory_space<vmem>>, vector<1x8x4xf32>
    %1 = vector.shape_cast %0 : vector<1x8x4xf32> to vector<8x4xf32>
    %c0_2 = arith.constant 0 : index
    %c0_3 = arith.constant 0 : index
    %2 = vector.load %arg3[%c0_2, %c0_3] : memref<128x4xf32, #tpu.memory_space<vmem>>, vector<128x4xf32>
    %cst = arith.constant dense<0.000000e+00> : vector<8x128xf32>
    %3 = tpu.matmul %1, %2, %cst {dimension_numbers = #tpu.dot_dimension_numbers<[1], [1], [0], [0], [0, 0, 1, 0], [], []>} : vector<8x4xf32>, vector<128x4xf32>, vector<8x128xf32> -> vector<8x128xf32>
    %c0_4 = arith.constant 0 : index
    %c0_5 = arith.constant 0 : index
    %4 = vector.load %arg4[%c0_4, %c0_5] : memref<1x128xf32, #tpu.memory_space<vmem>>, vector<1x128xf32>
    %5 = vector.broadcast %4 : vector<1x128xf32> to vector<8x128xf32>
    %6 = arith.addf %3, %5 : vector<8x128xf32>
    %c0_6 = arith.constant 0 : index
    %c0_7 = arith.constant 0 : index
    %7 = vector.load %arg5[%c0_6, %c0_7] : memref<8x128xf32, #tpu.memory_space<vmem>>, vector<8x128xf32>
    %8 = arith.addf %6, %7 : vector<8x128xf32>
    %c0_8 = arith.constant 0 : index
    %c0_9 = arith.constant 0 : index
    %c0_10 = arith.constant 0 : index
    %9 = vector.load %arg6[%c0_8, %c0_9, %c0_10] : memref<1x8x128xf32, #tpu.memory_space<vmem>>, vector<1x8x128xf32>
    %10 = vector.shape_cast %9 : vector<1x8x128xf32> to vector<8x128xf32>
    %11 = vector.shape_cast %8 : vector<8x128xf32> to vector<1x8x128xf32>
    tpu.vector_store %arg6[%c0_8, %c0_9, %c0_10], %11 {strides = array<i32>} : memref<1x8x128xf32, #tpu.memory_space<vmem>>, vector<1x8x128xf32>,
    return
  }
  func.func @transform_0(%arg0: i32, %arg1: i32) -> (i32, i32, i32) {
    %c0_i32 = arith.constant 0 : i32
    %c0_i32_0 = arith.constant 0 : i32
    return %arg1, %arg0, %c0_i32 : i32, i32, i32
  }
  func.func @transform_1(%arg0: i32, %arg1: i32) -> (i32, i32) {
    %c0_i32 = arith.constant 0 : i32
    %c0_i32_0 = arith.constant 0 : i32
    %c0_i32_1 = arith.constant 0 : i32
    return %c0_i32, %c0_i32_0 : i32, i32
  }
  func.func @transform_2(%arg0: i32, %arg1: i32) -> (i32, i32) {
    %c0_i32 = arith.constant 0 : i32
    %c0_i32_0 = arith.constant 0 : i32
    %c0_i32_1 = arith.constant 0 : i32
    return %c0_i32, %c0_i32_0 : i32, i32
  }
  func.func @transform_3(%arg0: i32, %arg1: i32) -> (i32, i32) {
    %c0_i32 = arith.constant 0 : i32
    %c0_i32_0 = arith.constant 0 : i32
    return %arg0, %c0_i32 : i32, i32
  }
  func.func @transform_4(%arg0: i32, %arg1: i32) -> (i32, i32, i32) {
    %c0_i32 = arith.constant 0 : i32
    %c0_i32_0 = arith.constant 0 : i32
    return %arg1, %arg0, %c0_i32 : i32, i32, i32
  }
}

</mosaic_0001>

<bundles_post_ra>
// kernel: tpu_custom_call.1
= control target key start
LH: loop header
LB: loop body
LE: loop exit
PB: predicated region body
PF: predicated region fallthrough
CT: control target
= control target key end

     0   :  { %9 = vsyncpa [#allocation3], 0  ;;  %s955_s0 = inlined_call_operand.vmem [shape: f32[2,8,4], index: 0, kind: input, shape index: {}]   ;;  %s956_s1 = inlined_call_operand.vmem [shape: f32[128,4], index: 1, kind: input, shape index: {}]   ;;  %s957_s2 = inlined_call_operand.vmem [shape: f32[1,128], index: 2, kind: input, shape index: {}]   ;;  %s958_s3 = inlined_call_operand.vmem [shape: f32[8,128], index: 3, kind: input, shape index: {}]   ;;  %s959_s4 = inlined_call_operand.hbm [shape: f32[2,8,128], index: 4, kind: output, shape index: {}]  }
   0x1   :  { %11 = vsyncpa [#allocation3 + $0x1], 0  ;;  %s766_s15 = smov 0   ;;  %s768_s16 = smov 0  }
   0x2   :  { %s770_s17 = smov 0   ;;  %s772_s18 = smov 0  }
   0x3   :  { %s774_s19 = smov 0   ;;  %s776_s20 = smov 0  }
   0x4 LB: > { %s485_s21 = sadd.s32 4294967295, %s735_s20   ;;  %s486_s22 = sadd.s32 4294967294, %s735_s20   ;;  %s735_s20 = sphi %s776_s20, %s17_s20   ;;  %s731_s19 = sphi %s774_s19, %s968_s19   ;;  %s727_s18 = sphi %s772_s18, %s967_s18   ;;  %s723_s17 = sphi %s770_s17, %s966_s17   ;;  %s719_s16 = sphi %s768_s16, %s965_s16   ;;  %s715_s15 = sphi %s766_s15, %s964_s15  }
   0x5   : > { %s26_s23 = sadd.s32 1, %s731_s19  ;;  %s134_s24 = sadd.s32 1, %s723_s17 }
   0x6   : > { %p27_p0 = scmp.ge.s32.totalorder %s26_s23, 2  ;;  %p144_p1 = scmp.ne.s32.totalorder %s723_s17, %s719_s16 }
   0x7   : > { %p145_p2 = scmp.eq.s32.totalorder %s485_s21, 1  ;;  %p150_p3 = scmp.ne.s32.totalorder %s719_s16, %s715_s15 }
   0x8   : > { %s970_s23 = smov (%p27_p0, %s26_s23), 0  ;;  %p151_p5 = scmp.eq.s32.totalorder %s486_s22, 1 }
   0x9   : > { %p806_p4 = por %p145_p2, %p144_p1  ;;  %s129_s26 = ssub.s32 %s731_s19, %s970_s23 }
   0xa   : > { %p490_p6 = scmp.ge.s32.totalorder %s735_s20, 1  ;;  %p132_p7 = scmp.eq.s32.totalorder %s129_s26, 0 }
   0xb   : > { %p813_p8 = por %p151_p5, %p150_p3  ;;  %p192_p9 = scmp.lt.s32.totalorder %s735_s20, 3 }
   0xc   : > { %s819_s28 = scalar_select %p132_p7, %s723_s17, %s134_s24  }
   0xd   : > { %p193_p10 = pnand %p490_p6, %p192_p9 }
   0xe   : > { %v236_v0 = vld [vmem:[%s956_s1] sm:$0xff] (!%p193_p10)  ;;  %v237_v1 = vld [vmem:[%s956_s1 + $0x8] sm:$0xff] (!%p193_p10)  ;;  %vm259_vm0 = vcmask (!%p193_p10), 31744   ;;  %v737_v2 = vmov (!%p193_p10), 0.0|0.0   ;;  %vm738_vm2 = vmmov (!%p193_p10), 0   ;;  %v739_v5 = vmov (!%p193_p10), 0.0  }
   0xf   : > { %196 = sbr.rel (%p193_p10) target bundleno = 310 (0x136), region = 36  ;;  %567 = vmatprep.subr.bf16.mxu0 (!%p193_p10), %v737_v2  ;;  %v568_v3 = vpack.c.bf16 (!%p193_p10), %v237_v1, %v236_v0  ;;  %vm829_vm1 = vmpackc.low (!%p193_p10), %vm259_vm0, %vm259_vm0  ;;  %564 = vmatprep.mubr.msk.f32.mxu0 (!%p193_p10), %vm738_vm2, %v739_v5  ;;  %v238_v6 = vld [vmem:[%s956_s1 + $0x10] sm:$0xff] (!%p193_p10)  ;;  %v239_v7 = vld [vmem:[%s956_s1 + $0x18] sm:$0xff] (!%p193_p10)  ;;  %p224_p11 = scmp.lt.s32.totalorder (!%p193_p10), %s727_s18, 1 }
  0x10   : > { %v572_v8 = vpack.c.bf16 (!%p193_p10), %v239_v7, %v238_v6  ;;  %v240_v9 = vld [vmem:[%s956_s1 + $0x20] sm:$0xff] (!%p193_p10)  ;;  %v241_v10 = vld [vmem:[%s956_s1 + $0x28] sm:$0xff] (!%p193_p10)  ;;  %v242_v12 = vld [vmem:[%s956_s1 + $0x30] sm:$0xff] (!%p193_p10)  ;;  %s221_s8 = sand.u32 (!%p193_p10), 1, %s719_s16   ;;  %s512_s14 = sshll.u32 (!%p193_p10), %s727_s18, 7 }
  0x11   : > { %570 = vmatpush3.bf16.xpose.msk.msra.mxu0 (!%p193_p10), %vm829_vm1, %v568_v3  ;;  %v576_v11 = vpack.c.bf16 (!%p193_p10), %v241_v10, %v240_v9  ;;  %v243_v13 = vld [vmem:[%s956_s1 + $0x38] sm:$0xff] (!%p193_p10)  ;;  %v244_v15 = vld [vmem:[%s956_s1 + $0x40] sm:$0xff] (!%p193_p10)  ;;  %v245_v16 = vld [vmem:[%s956_s1 + $0x48] sm:$0xff] (!%p193_p10)  ;;  %s491_s9 = sshll.u32 (!%p193_p10), %s221_s8, 3 }
  0x12   : > { %571 = vmatprep.subr.bf16.mxu0 (!%p193_p10), %v737_v2  ;;  %v580_v14 = vpack.c.bf16 (!%p193_p10), %v243_v13, %v242_v12  ;;  %v584_v17 = vpack.c.bf16 (!%p193_p10), %v245_v16, %v244_v15  ;;  %v246_v18 = vld [vmem:[%s956_s1 + $0x50] sm:$0xff] (!%p193_p10)  ;;  %v247_v19 = vld [vmem:[%s956_s1 + $0x58] sm:$0xff] (!%p193_p10)  ;;  %v248_v21 = vld [vmem:[%s956_s1 + $0x60] sm:$0xff] (!%p193_p10)  ;;  %s223_s21 = scalar_lea.vmem (!%p193_p10), [#allocation2], %s491_s9 }
  0x13   : > { %v588_v20 = vpack.c.bf16 (!%p193_p10), %v247_v19, %v246_v18  ;;  %v249_v22 = vld [vmem:[%s956_s1 + $0x68] sm:$0xff] (!%p193_p10)  ;;  %v250_v24 = vld [vmem:[%s956_s1 + $0x70] sm:$0xff] (!%p193_p10)  ;;  %v251_v25 = vld [vmem:[%s956_s1 + $0x78] sm:$0xff] (!%p193_p10)  ;;  %s399_s22 = sshll.u32 (!%p193_p10), %s223_s21, 4  ;;  %s910_s22 = int_to_ptr.vmem [resolvable:$true] %s399_s22 }
  0x14   : > { %v592_v23 = vpack.c.bf16 (!%p193_p10), %v249_v22, %v248_v21  ;;  %v596_v26 = vpack.c.bf16 (!%p193_p10), %v251_v25, %v250_v24  ;;  %v493_v28 = vld [vmem:[%s957_s2] ss:$0 sm:$0xff] (!%p193_p10)  ;;  %s657_s5 = scalar_lea.vmem (!%p193_p10), %s910_s22, 128 }
  0x15   : > { %v381_v30 = vld [vmem:[%s958_s3] sm:$0xff] (!%p193_p10)  ;;  %p658_p12 = scmp.ne.s32.totalorder (!%p193_p10), %s910_s22, %s657_s5 }
  0x16   : > { %s225_s29 = scalar_select %p224_p11, %s727_s18, 1 }
  0x17   : > { %p659_p13 = pnand %p658_p12, %p806_p4  ;;  %s740_s18 = smov [#allocation2]  }
  0x18   : > { %s492_s30 = sshll.u32 %s225_s29, 3  ;;  %s908_s29 = scalar_lea.hbm %s959_s4, %s512_s14 }
  0x19   : > { %574 = vmatpush3.bf16.xpose.msk.msra.mxu0 %vm829_vm1, %v572_v8  ;;  %s230_s7 = scalar_lea.vmem %s955_s0, %s492_s30  ;;  %s385_s30 = scalar_lea.sflag [#allocation3], %s221_s8 }
  0x1a   : > { %575 = vmatprep.subr.bf16.mxu0 %v737_v2  ;;  %v235_v27 = vld [vmem:[%s230_s7] sm:$0xff]  ;;  %p660_p0 = pneg %p659_p13  ;;  %s661_s6 = sshll.u32 %s740_s18, 4  ;;  %s662_s6 = int_to_ptr.vmem [resolvable:$false] %s661_s6 }
  0x1b   : > { %s663_s7 = scalar_lea.vmem %s662_s6, 256  ;;  %p664_p1 = scmp.lt.s32.totalorder %s910_s22, %s662_s6 }
  0x1c   : > { %p665_p2 = scmp.lt.s32.totalorder %s663_s7, %s657_s5 }
  0x1e   : > { %p666_p3 = por %p665_p2, %p664_p1 }
  0x20   : > { %p667_p5 = pnand %p666_p3, %p660_p0 }
  0x21   : > { %578 = vmatpush3.bf16.xpose.msk.msra.mxu0 %vm829_vm1, %v576_v11 }
  0x22   : > { %579 = vmatprep.subr.bf16.mxu0 %v737_v2 }
  0x29   : > { %582 = vmatpush3.bf16.xpose.msk.msra.mxu0 %vm829_vm1, %v580_v14 }
  0x2a   : > { %583 = vmatprep.subr.bf16.mxu0 %v737_v2 }
  0x31   : > { %586 = vmatpush3.bf16.xpose.msk.msra.mxu0 %vm829_vm1, %v584_v17 }
  0x32   : > { %587 = vmatprep.subr.bf16.mxu0 %v737_v2 }
  0x39   : > { %590 = vmatpush3.bf16.xpose.msk.msra.mxu0 %vm829_vm1, %v588_v20 }
  0x3a   : > { %591 = vmatprep.subr.bf16.mxu0 %v737_v2 }
  0x41   : > { %594 = vmatpush3.bf16.xpose.msk.msra.mxu0 %vm829_vm1, %v592_v23 }
  0x42   : > { %595 = vmatprep.subr.bf16.mxu0 %v737_v2 }
  0x49   : > { %598 = vmatpush3.bf16.xpose.msk.msra.mxu0 %vm829_vm1, %v596_v26 }
  0x50   : > { %565 = vmatmul.mubr.msk.f32.vlgmr.msra.gmra.mrb[0].mxu0 %vm259_vm0, %v235_v27 }
 0x123   : > { %v377_v29 = vpop.f32.mrb[0].mxu0 }
 0x124   : > { %v378_v31 = vadd.f32 %v493_v28, %v377_v29  ;;  %v566_v32 = vpop.f32.mrb[1].mxu0 }
 0x126   : > { %v382_v33 = vadd.f32 %v381_v30, %v378_v31 }
 0x128   : > { %383 = vst [vmem:[%s223_s21] sm:$0xff] %v382_v33 }
 0x129   : > { %670 = shalt.err (!%p667_p5)
}
 0x12a   : > { %s671_s8 = scalar_lea.hbm %s908_s29, 128  ;;  %s675_s11 = scalar_lea.hbm %s959_s4, 256 }
 0x12b   : > { %p672_p6 = scmp.ne.s32.totalorder %s908_s29, %s671_s8  ;;  %p676_p10 = scmp.lt.u32.totalorder %s908_s29, %s959_s4 }
 0x12c   : > { %p677_p11 = scmp.lt.u32.totalorder %s675_s11, %s671_s8  ;;  %p679_p13 = scmp.lt.u32.totalorder %s671_s8, %s908_s29 }
 0x12d   : > { %p673_p7 = pnand %p672_p6, %p806_p4 }
 0x12e   : > { %p678_p12 = por %p677_p11, %p676_p10 }
 0x12f   : > { %p674_p9 = pneg %p673_p7 }
 0x130   : > { %p680_p0 = por %p679_p13, %p678_p12 }
 0x132   : > { %p681_p1 = pnand %p680_p0, %p674_p9 }
 0x134   : > { %684 = shalt.err (!%p681_p1)
}
 0x135   : > { %599 = dma.vmem_to_hbm [thread:$0]  (%p806_p4), %s910_s22, 128, %s908_s29, %s385_s30  }
 0x136 PF: > { %p605_p2 = scmp.ge.s32.totalorder %s735_s20, 2  ;;  %s411_s14 = sand.u32 1, %s715_s15  }
 0x137   : > { %s412_s21 = scalar_lea.sflag [#allocation3], %s411_s14 }
 0x138   : > { %p602_p3 = pnand %p605_p2, %p813_p8 }
 0x13a   : > { %710 = dma.done.wait (!%p602_p3), %s412_s21, 128  }
 0x13b   : > { %712 = vsyncadd (!%p602_p3), %s412_s21, 4294967168  ;;  %s17_s20 = sadd.s32 1, %s735_s20   ;;  %s964_s15 = smov %s719_s16 }
 0x13c   : > { %p14_p5 = scmp.ge.s32.totalorder %s17_s20, 4   ;;  %s965_s16 = smov %s723_s17 }
 0x13d   : > { %s966_s17 = smov %s819_s28  ;;  %s967_s18 = smov %s731_s19 }
 0x13e   : > { %s968_s19 = smov %s970_s23  ;;  %16 = sbr.rel (!%p14_p5) target bundleno = 4 (0x4), region = 74 }
 0x145   :  { %417 = vsyncpa [#allocation3], 1 }
 0x146   :  { %419 = vsyncpa [#allocation3 + $0x1], 1 }

</bundles_post_ra>
